<compile_context>
chip_gen: v7x
topology: tpu7x:2x2x1
jax: 0.10.0
libtpu: 0.0.40
codegen_flags: <defaults>
</compile_context>

<pallas_src>
import jax
import jax.numpy as jnp
from jax.experimental import pallas as pl
from jax.experimental.pallas import tpu as pltpu


def _round_up(x, m):
    return ((x + m - 1) // m) * m


# ----------------------------------------------------------------------------
# Kernel: in-kernel embedding gather (one-hot matmul) -> deep MLP ->
#         wide/deep projection (VPU multiply + sublane reduce) -> sigmoid.
# All activations are feature-major (features, batch): batch lives on lanes.
# ----------------------------------------------------------------------------
def _make_widedeep_kernel(field_sizes, n_hidden_layers, compute_dtype):
    total_size = sum(field_sizes)
    n_fields = len(field_sizes)

    def kernel(*refs):
        # refs layout:
        #   deep_idx_ref (n_fields, TB) int32   [indices with field offsets pre-added]
        #   wide_ref     (num_wide, TB) f32
        #   tbl_ref      (deep_in, total_size)  [block-diag transposed tables]
        #   (w_t (out,in), b_col (out,1) f32) * n_hidden_layers
        #   wpw_ref (num_wide,1) f32, wpd_ref (H_last,1) f32, bp_ref (1,1) f32
        #   out_ref (1, TB) f32
        deep_idx_ref, wide_ref, tbl_ref = refs[0], refs[1], refs[2]
        layer_refs = refs[3:3 + 2 * n_hidden_layers]
        wpw_ref, wpd_ref, bp_ref = refs[3 + 2 * n_hidden_layers:-1]
        out_ref = refs[-1]

        tb = out_ref.shape[1]

        # ---- fused gather+concat: one-hot build (VPU) + single MXU matmul ----
        idx = deep_idx_ref[...]                                 # (n_fields, TB)
        row_ids = jax.lax.broadcasted_iota(jnp.int32, (total_size, tb), 0)
        onehot = jnp.zeros((total_size, tb), compute_dtype)
        for f in range(n_fields):
            onehot = onehot + (row_ids == idx[f][None, :]).astype(compute_dtype)
        # block-diag transposed tables: (deep_in, total) @ (total, TB)
        h32 = jnp.dot(tbl_ref[...], onehot,
                      preferred_element_type=jnp.float32)      # (deep_in, TB)

        # ---- deep MLP (feature-major; f32 accumulation) ----
        h = h32.astype(compute_dtype)
        for i in range(n_hidden_layers):
            w_t = layer_refs[2 * i][...]                        # (out, in)
            b_col = layer_refs[2 * i + 1][...]                  # (out, 1) f32
            h32 = jnp.dot(w_t, h, preferred_element_type=jnp.float32) + b_col
            h32 = jnp.maximum(h32, 0.0)                         # ReLU in f32
            h = h32.astype(compute_dtype)

        # ---- wide&deep projection: N=1, so VPU multiply + sublane reduce ----
        logit = (jnp.sum(wide_ref[...] * wpw_ref[...], axis=0, keepdims=True)
                 + jnp.sum(h32 * wpd_ref[...], axis=0, keepdims=True)
                 + bp_ref[...])                                 # (1, TB) lane-dense
        out_ref[...] = jax.nn.sigmoid(logit)

    return kernel


def widedeep_forward(wide_input, deep_input, params, *,
                     compute_dtype=jnp.bfloat16, max_batch_tile=16384,
                     vmem_limit_bytes=32 * 1024 * 1024):
    """wide_input: (B, num_wide) f32; deep_input: (B, n_fields) int32."""
    B, num_wide = wide_input.shape
    n_fields = deep_input.shape[1]

    tables = params["embeds"]
    field_sizes = tuple(int(t.shape[0]) for t in tables)
    field_dims = tuple(int(t.shape[1]) for t in tables)
    deep_in = sum(field_dims)
    total_size = sum(field_sizes)

    # ---- batch tiling: batch on lanes, 128-multiple tiles ------------------
    TB = min(max_batch_tile, _round_up(B, 128))
    if _round_up(B, TB) == TB and TB >= 256:
        # Keep >= 2 grid steps so the "parallel" batch axis can shard across
        # the two TensorCores on v7x (harmless on v5e/v6e).
        TB = _round_up(TB // 2, 128)
    B_pad = _round_up(B, TB)
    pad = B_pad - B

    # ---- per-sample streams: only f32 wide feats + int32 field indices -----
    wide_t = jnp.pad(wide_input.T, ((0, 0), (0, pad)))          # (num_wide, B_pad) f32
    field_offsets = jnp.cumsum(jnp.array((0,) + field_sizes[:-1], jnp.int32))
    deep_idx_t = jnp.pad(
        (deep_input.astype(jnp.int32) + field_offsets[None, :]).T,
        ((0, 0), (0, pad)))                                     # (n_fields, B_pad) int32

    # ---- resident block-diagonal transposed embedding table ----------------
    # TODO(synk): for large vocabularies keep tables in HBM (memory_space=pl.ANY)
    # and DMA-gather rows instead of a resident VMEM one-hot matmul.
    big_tbl = jnp.zeros((deep_in, total_size), jnp.float32)
    r = c = 0
    for t, size, dim in zip(tables, field_sizes, field_dims):
        big_tbl = big_tbl.at[r:r + dim, c:c + size].set(t.T)
        r += dim
        c += size
    big_tbl = big_tbl.astype(compute_dtype)

    linears = params["linears"]
    Wp, bp = params["proj"]                                      # Wp: (num_wide + H_last, 1)

    layer_ops = []
    flops = 2 * B_pad * deep_in * total_size                     # gather matmul
    for (W, b) in linears:                                       # W: (in, out)
        layer_ops += [W.T.astype(compute_dtype),                 # (out, in)
                      b.reshape(-1, 1).astype(jnp.float32)]      # (out, 1)
        flops += 2 * B_pad * W.shape[0] * W.shape[1]

    wpw_col = Wp[:num_wide, :].astype(jnp.float32)               # (num_wide, 1)
    wpd_col = Wp[num_wide:, :].astype(jnp.float32)               # (H_last, 1)
    bp_mat = bp.reshape(1, 1).astype(jnp.float32)                # (1, 1)
    proj_ops = [wpw_col, wpd_col, bp_mat]
    flops += 2 * B_pad * (num_wide + wpd_col.shape[0])

    resident_ops = [big_tbl] + layer_ops + proj_ops
    operands = [deep_idx_t, wide_t] + resident_ops
    bytes_accessed = sum(int(o.size) * o.dtype.itemsize for o in operands) + B_pad * 4

    kernel = _make_widedeep_kernel(field_sizes, len(linears), compute_dtype)

    def _call(resident_mode):
        def res_spec(arr):
            # Constant index_map -> operand stays resident in VMEM across steps.
            if resident_mode is None:
                return pl.BlockSpec(arr.shape, lambda i: (0, 0))
            return pl.BlockSpec(arr.shape, lambda i: (0, 0),
                                pipeline_mode=resident_mode)

        in_specs = [pl.BlockSpec((n_fields, TB), lambda i: (0, i)),
                    pl.BlockSpec((num_wide, TB), lambda i: (0, i))]
        in_specs += [res_spec(o) for o in resident_ops]

        return pl.pallas_call(
            kernel,
            out_shape=jax.ShapeDtypeStruct((1, B_pad), jnp.float32),
            grid=(B_pad // TB,),
            in_specs=in_specs,
            out_specs=pl.BlockSpec((1, TB), lambda i: (0, i)),   # lane-dense output
            compiler_params=pltpu.CompilerParams(
                dimension_semantics=("parallel",),               # megacore on v7x
                vmem_limit_bytes=vmem_limit_bytes),
            cost_estimate=pl.CostEstimate(flops=flops,
                                          transcendentals=2 * B_pad,
                                          bytes_accessed=bytes_accessed),
        )(*operands)

    try:
        # Weights/tables never change across grid steps -> single-buffer them
        # (frees VMEM headroom for large batch tiles).
        out = _call(pl.Buffered(1))
    except Exception:
        # pipeline_mode unsupported on this JAX build; default double buffering
        # only costs a little extra VMEM for these tiny resident operands.
        out = _call(None)

    # torch .squeeze(): (B,)
    return out[0, :B]


# ----------------------------------------------------------------------------
# Deterministic parameter construction (mirrors nn.Embedding / nn.Linear shapes)
# ----------------------------------------------------------------------------
def init_params(key, num_wide_feat, deep_feat_sizes, deep_feat_dims, nhiddens):
    params = {"embeds": [], "linears": []}
    for size, dim in zip(deep_feat_sizes, deep_feat_dims):
        key, k = jax.random.split(key)
        params["embeds"].append(
            jax.random.normal(k, (size, dim), jnp.float32) * 0.1)

    in_size = sum(deep_feat_dims)
    for out_size in nhiddens:
        key, kw, kb = jax.random.split(key, 3)
        W = jax.random.normal(kw, (in_size, out_size), jnp.float32) * 0.1
        b = jax.random.normal(kb, (out_size,), jnp.float32) * 0.1
        params["linears"].append((W, b))
        in_size = out_size

    key, kw, kb = jax.random.split(key, 3)
    Wp = jax.random.normal(kw, (in_size + num_wide_feat, 1), jnp.float32) * 0.1
    bp = jax.random.normal(kb, (1,), jnp.float32) * 0.1
    params["proj"] = (Wp, bp)
    return params


# Pure-JAX reference (same math as the PyTorch forward) for sanity checking.
def widedeep_ref(wide_input, deep_input, params):
    feats = [t[deep_input[:, i]] for i, t in enumerate(params["embeds"])]
    h = jnp.concatenate(feats, axis=1)
    for (W, b) in params["linears"]:
        h = jnp.maximum(h @ W + b, 0.0)
    x = jnp.concatenate([wide_input, h], axis=-1)
    Wp, bp = params["proj"]
    return jax.nn.sigmoid(x @ Wp + bp)[:, 0]


if __name__ == "__main__":
    # Small, forward-consistent config.
    batch = 8
    num_wide_feat = 4
    deep_feat_sizes = [10, 20, 30]
    deep_feat_dims = [8, 8, 16]
    nhiddens = [32, 16]

    key = jax.random.PRNGKey(0)
    key, k_params, k_wide, k_deep = jax.random.split(key, 4)

    params = init_params(k_params, num_wide_feat, deep_feat_sizes,
                         deep_feat_dims, nhiddens)

    wide_input = jax.random.normal(k_wide, (batch, num_wide_feat), jnp.float32)
    deep_cols = []
    for i, size in enumerate(deep_feat_sizes):
        k_deep, k = jax.random.split(k_deep)
        deep_cols.append(jax.random.randint(k, (batch,), 0, size, jnp.int32))
    deep_input = jnp.stack(deep_cols, axis=1)  # (batch, num_deep_fields)

    ref = widedeep_ref(wide_input, deep_input, params)

    # f32 compute path (tight tolerance; exact one-hot gather).
    out_f32 = widedeep_forward(wide_input, deep_input, params,
                               compute_dtype=jnp.float32)
    out_f32 = jax.block_until_ready(out_f32)
    assert out_f32.shape == (batch,)
    assert jnp.allclose(out_f32, ref, atol=1e-4, rtol=1e-4)

    # bf16 compute path (MXU-native on v6e/v7x; f32 accumulation).
    out_bf16 = widedeep_forward(wide_input, deep_input, params,
                                compute_dtype=jnp.bfloat16)
    out_bf16 = jax.block_until_ready(out_bf16)
    assert out_bf16.shape == (batch,)
    assert jnp.allclose(out_bf16, ref, atol=2e-2, rtol=2e-2)

    print("KERNEL_OK")
</pallas_src>

<mosaic_0001>
module attributes {stable_mosaic.version = 11 : i64} {
  func.func @kernel(%arg0: i32, %arg1: memref<3x128xi32, #tpu.memory_space<vmem>>, %arg2: memref<4x128xf32, #tpu.memory_space<vmem>>, %arg3: memref<32x60xf32, #tpu.memory_space<vmem>>, %arg4: memref<32x32xf32, #tpu.memory_space<vmem>>, %arg5: memref<32x1xf32, #tpu.memory_space<vmem>>, %arg6: memref<16x32xf32, #tpu.memory_space<vmem>>, %arg7: memref<16x1xf32, #tpu.memory_space<vmem>>, %arg8: memref<4x1xf32, #tpu.memory_space<vmem>>, %arg9: memref<16x1xf32, #tpu.memory_space<vmem>>, %arg10: memref<1x1xf32, #tpu.memory_space<vmem>>, %arg11: memref<1x128xf32, #tpu.memory_space<vmem>>) attributes {dimension_semantics = [#tpu.dimension_semantics<parallel>], iteration_bounds = array<i64: 1>, scalar_prefetch = 0 : i64, scratch_operands = 0 : i64, tpu.core_type = #tpu.core_type<tc>, window_params = [{transform_indices = @transform_0, window_bounds = array<i64: 3, 128>}, {transform_indices = @transform_1, window_bounds = array<i64: 4, 128>}, {pipeline_mode = #tpu.pipeline_mode<synchronous>, transform_indices = @transform_2, window_bounds = array<i64: 32, 60>}, {pipeline_mode = #tpu.pipeline_mode<synchronous>, transform_indices = @transform_3, window_bounds = array<i64: 32, 32>}, {pipeline_mode = #tpu.pipeline_mode<synchronous>, transform_indices = @transform_4, window_bounds = array<i64: 32, 1>}, {pipeline_mode = #tpu.pipeline_mode<synchronous>, transform_indices = @transform_5, window_bounds = array<i64: 16, 32>}, {pipeline_mode = #tpu.pipeline_mode<synchronous>, transform_indices = @transform_6, window_bounds = array<i64: 16, 1>}, {pipeline_mode = #tpu.pipeline_mode<synchronous>, transform_indices = @transform_7, window_bounds = array<i64: 4, 1>}, {pipeline_mode = #tpu.pipeline_mode<synchronous>, transform_indices = @transform_8, window_bounds = array<i64: 16, 1>}, {pipeline_mode = #tpu.pipeline_mode<synchronous>, transform_indices = @transform_9, window_bounds = array<i64: 1, 1>}, {transform_indices = @transform_10, window_bounds = array<i64: 1, 128>}]} {
    %c0 = arith.constant 0 : index
    %c0_0 = arith.constant 0 : index
    %0 = vector.load %arg1[%c0, %c0_0] : memref<3x128xi32, #tpu.memory_space<vmem>>, vector<3x128xi32>
    %1 = tpu.iota {dimensions = array<i32: 0>} : vector<60x128xi32>
    %cst = arith.constant 0.000000e+00 : f32
    %2 = vector.broadcast %cst : f32 to vector<60x128xf32>
    %3 = vector.extract_strided_slice %0 {offsets = [0, 0], sizes = [1, 128], strides = [1, 1]} : vector<3x128xi32> to vector<1x128xi32>
    %4 = vector.shape_cast %3 : vector<1x128xi32> to vector<128xi32>
    %5 = vector.shape_cast %4 : vector<128xi32> to vector<1x128xi32>
    %6 = vector.broadcast %5 : vector<1x128xi32> to vector<60x128xi32>
    %7 = arith.cmpi eq, %1, %6 : vector<60x128xi32>
    %8 = arith.extui %7 : vector<60x128xi1> to vector<60x128xi32>
    %9 = arith.sitofp %8 : vector<60x128xi32> to vector<60x128xf32>
    %10 = arith.addf %2, %9 : vector<60x128xf32>
    %11 = vector.extract_strided_slice %0 {offsets = [1, 0], sizes = [1, 128], strides = [1, 1]} : vector<3x128xi32> to vector<1x128xi32>
    %12 = vector.shape_cast %11 : vector<1x128xi32> to vector<128xi32>
    %13 = vector.shape_cast %12 : vector<128xi32> to vector<1x128xi32>
    %14 = vector.broadcast %13 : vector<1x128xi32> to vector<60x128xi32>
    %15 = arith.cmpi eq, %1, %14 : vector<60x128xi32>
    %16 = arith.extui %15 : vector<60x128xi1> to vector<60x128xi32>
    %17 = arith.sitofp %16 : vector<60x128xi32> to vector<60x128xf32>
    %18 = arith.addf %10, %17 : vector<60x128xf32>
    %19 = vector.extract_strided_slice %0 {offsets = [2, 0], sizes = [1, 128], strides = [1, 1]} : vector<3x128xi32> to vector<1x128xi32>
    %20 = vector.shape_cast %19 : vector<1x128xi32> to vector<128xi32>
    %21 = vector.shape_cast %20 : vector<128xi32> to vector<1x128xi32>
    %22 = vector.broadcast %21 : vector<1x128xi32> to vector<60x128xi32>
    %23 = arith.cmpi eq, %1, %22 : vector<60x128xi32>
    %24 = arith.extui %23 : vector<60x128xi1> to vector<60x128xi32>
    %25 = arith.sitofp %24 : vector<60x128xi32> to vector<60x128xf32>
    %26 = arith.addf %18, %25 : vector<60x128xf32>
    %c0_1 = arith.constant 0 : index
    %c0_2 = arith.constant 0 : index
    %27 = vector.load %arg3[%c0_1, %c0_2] : memref<32x60xf32, #tpu.memory_space<vmem>>, vector<32x60xf32>
    %cst_3 = arith.constant dense<0.000000e+00> : vector<32x128xf32>
    %28 = tpu.matmul %27, %26, %cst_3 {dimension_numbers = #tpu.dot_dimension_numbers<[1], [0], [0], [1], [0, 0, 1, 1], [], []>} : vector<32x60xf32>, vector<60x128xf32>, vector<32x128xf32> -> vector<32x128xf32>
    %c0_4 = arith.constant 0 : index
    %c0_5 = arith.constant 0 : index
    %29 = vector.load %arg4[%c0_4, %c0_5] : memref<32x32xf32, #tpu.memory_space<vmem>>, vector<32x32xf32>
    %c0_6 = arith.constant 0 : index
    %c0_7 = arith.constant 0 : index
    %30 = vector.load %arg5[%c0_6, %c0_7] : memref<32x1xf32, #tpu.memory_space<vmem>>, vector<32x1xf32>
    %cst_8 = arith.constant dense<0.000000e+00> : vector<32x128xf32>
    %31 = tpu.matmul %29, %28, %cst_8 {dimension_numbers = #tpu.dot_dimension_numbers<[1], [0], [0], [1], [0, 0, 1, 1], [], []>} : vector<32x32xf32>, vector<32x128xf32>, vector<32x128xf32> -> vector<32x128xf32>
    %32 = vector.broadcast %30 : vector<32x1xf32> to vector<32x128xf32>
    %33 = arith.addf %31, %32 : vector<32x128xf32>
    %cst_9 = arith.constant 0.000000e+00 : f32
    %34 = vector.broadcast %cst_9 : f32 to vector<32x128xf32>
    %35 = arith.maximumf %33, %34 : vector<32x128xf32>
    %c0_10 = arith.constant 0 : index
    %c0_11 = arith.constant 0 : index
    %36 = vector.load %arg6[%c0_10, %c0_11] : memref<16x32xf32, #tpu.memory_space<vmem>>, vector<16x32xf32>
    %c0_12 = arith.constant 0 : index
    %c0_13 = arith.constant 0 : index
    %37 = vector.load %arg7[%c0_12, %c0_13] : memref<16x1xf32, #tpu.memory_space<vmem>>, vector<16x1xf32>
    %cst_14 = arith.constant dense<0.000000e+00> : vector<16x128xf32>
    %38 = tpu.matmul %36, %35, %cst_14 {dimension_numbers = #tpu.dot_dimension_numbers<[1], [0], [0], [1], [0, 0, 1, 1], [], []>} : vector<16x32xf32>, vector<32x128xf32>, vector<16x128xf32> -> vector<16x128xf32>
    %39 = vector.broadcast %37 : vector<16x1xf32> to vector<16x128xf32>
    %40 = arith.addf %38, %39 : vector<16x128xf32>
    %cst_15 = arith.constant 0.000000e+00 : f32
    %41 = vector.broadcast %cst_15 : f32 to vector<16x128xf32>
    %42 = arith.maximumf %40, %41 : vector<16x128xf32>
    %c0_16 = arith.constant 0 : index
    %c0_17 = arith.constant 0 : index
    %43 = vector.load %arg2[%c0_16, %c0_17] : memref<4x128xf32, #tpu.memory_space<vmem>>, vector<4x128xf32>
    %c0_18 = arith.constant 0 : index
    %c0_19 = arith.constant 0 : index
    %44 = vector.load %arg8[%c0_18, %c0_19] : memref<4x1xf32, #tpu.memory_space<vmem>>, vector<4x1xf32>
    %45 = vector.broadcast %44 : vector<4x1xf32> to vector<4x128xf32>
    %46 = arith.mulf %43, %45 : vector<4x128xf32>
    %cst_20 = arith.constant dense<0.000000e+00> : vector<128xf32>
    %47 = vector.multi_reduction <add>, %46, %cst_20 [0] : vector<4x128xf32> to vector<128xf32>
    %48 = vector.shape_cast %47 : vector<128xf32> to vector<1x128xf32>
    %c0_21 = arith.constant 0 : index
    %c0_22 = arith.constant 0 : index
    %49 = vector.load %arg9[%c0_21, %c0_22] : memref<16x1xf32, #tpu.memory_space<vmem>>, vector<16x1xf32>
    %50 = vector.broadcast %49 : vector<16x1xf32> to vector<16x128xf32>
    %51 = arith.mulf %42, %50 : vector<16x128xf32>
    %cst_23 = arith.constant dense<0.000000e+00> : vector<128xf32>
    %52 = vector.multi_reduction <add>, %51, %cst_23 [0] : vector<16x128xf32> to vector<128xf32>
    %53 = vector.shape_cast %52 : vector<128xf32> to vector<1x128xf32>
    %54 = arith.addf %48, %53 : vector<1x128xf32>
    %c0_24 = arith.constant 0 : index
    %c0_25 = arith.constant 0 : index
    %55 = vector.load %arg10[%c0_24, %c0_25] : memref<1x1xf32, #tpu.memory_space<vmem>>, vector<1x1xf32>
    %56 = vector.broadcast %55 : vector<1x1xf32> to vector<1x128xf32>
    %57 = arith.addf %54, %56 : vector<1x128xf32>
    %58 = arith.negf %57 : vector<1x128xf32>
    %59 = math.exp %58 : vector<1x128xf32>
    %cst_26 = arith.constant 1.000000e+00 : f32
    %60 = vector.broadcast %cst_26 : f32 to vector<1x128xf32>
    %61 = arith.addf %60, %59 : vector<1x128xf32>
    %62 = arith.divf %60, %61 : vector<1x128xf32>
    %c0_27 = arith.constant 0 : index
    %c0_28 = arith.constant 0 : index
    %63 = vector.load %arg11[%c0_27, %c0_28] : memref<1x128xf32, #tpu.memory_space<vmem>>, vector<1x128xf32>
    tpu.vector_store %arg11[%c0_27, %c0_28], %62 {strides = array<i32>} : memref<1x128xf32, #tpu.memory_space<vmem>>, vector<1x128xf32>,
    return
  }
  func.func @transform_0(%arg0: i32) -> (i32, i32) {
    %c0_i32 = arith.constant 0 : i32
    %c0_i32_0 = arith.constant 0 : i32
    return %c0_i32, %arg0 : i32, i32
  }
  func.func @transform_1(%arg0: i32) -> (i32, i32) {
    %c0_i32 = arith.constant 0 : i32
    %c0_i32_0 = arith.constant 0 : i32
    return %c0_i32, %arg0 : i32, i32
  }
  func.func @transform_2(%arg0: i32) -> (i32, i32) {
    %c0_i32 = arith.constant 0 : i32
    %c0_i32_0 = arith.constant 0 : i32
    %c0_i32_1 = arith.constant 0 : i32
    return %c0_i32, %c0_i32_0 : i32, i32
  }
  func.func @transform_3(%arg0: i32) -> (i32, i32) {
    %c0_i32 = arith.constant 0 : i32
    %c0_i32_0 = arith.constant 0 : i32
    %c0_i32_1 = arith.constant 0 : i32
    return %c0_i32, %c0_i32_0 : i32, i32
  }
  func.func @transform_4(%arg0: i32) -> (i32, i32) {
    %c0_i32 = arith.constant 0 : i32
    %c0_i32_0 = arith.constant 0 : i32
    %c0_i32_1 = arith.constant 0 : i32
    return %c0_i32, %c0_i32_0 : i32, i32
  }
  func.func @transform_5(%arg0: i32) -> (i32, i32) {
    %c0_i32 = arith.constant 0 : i32
    %c0_i32_0 = arith.constant 0 : i32
    %c0_i32_1 = arith.constant 0 : i32
    return %c0_i32, %c0_i32_0 : i32, i32
  }
  func.func @transform_6(%arg0: i32) -> (i32, i32) {
    %c0_i32 = arith.constant 0 : i32
    %c0_i32_0 = arith.constant 0 : i32
    %c0_i32_1 = arith.constant 0 : i32
    return %c0_i32, %c0_i32_0 : i32, i32
  }
  func.func @transform_7(%arg0: i32) -> (i32, i32) {
    %c0_i32 = arith.constant 0 : i32
    %c0_i32_0 = arith.constant 0 : i32
    %c0_i32_1 = arith.constant 0 : i32
    return %c0_i32, %c0_i32_0 : i32, i32
  }
  func.func @transform_8(%arg0: i32) -> (i32, i32) {
    %c0_i32 = arith.constant 0 : i32
    %c0_i32_0 = arith.constant 0 : i32
    %c0_i32_1 = arith.constant 0 : i32
    return %c0_i32, %c0_i32_0 : i32, i32
  }
  func.func @transform_9(%arg0: i32) -> (i32, i32) {
    %c0_i32 = arith.constant 0 : i32
    %c0_i32_0 = arith.constant 0 : i32
    %c0_i32_1 = arith.constant 0 : i32
    return %c0_i32, %c0_i32_0 : i32, i32
  }
  func.func @transform_10(%arg0: i32) -> (i32, i32) {
    %c0_i32 = arith.constant 0 : i32
    %c0_i32_0 = arith.constant 0 : i32
    return %c0_i32, %arg0 : i32, i32
  }
}

module attributes {stable_mosaic.version = 11 : i64} {
  func.func @kernel(%arg0: i32, %arg1: memref<3x128xi32, #tpu.memory_space<vmem>>, %arg2: memref<4x128xf32, #tpu.memory_space<vmem>>, %arg3: memref<32x60xf32, #tpu.memory_space<vmem>>, %arg4: memref<32x32xf32, #tpu.memory_space<vmem>>, %arg5: memref<32x1xf32, #tpu.memory_space<vmem>>, %arg6: memref<16x32xf32, #tpu.memory_space<vmem>>, %arg7: memref<16x1xf32, #tpu.memory_space<vmem>>, %arg8: memref<4x1xf32, #tpu.memory_space<vmem>>, %arg9: memref<16x1xf32, #tpu.memory_space<vmem>>, %arg10: memref<1x1xf32, #tpu.memory_space<vmem>>, %arg11: memref<1x128xf32, #tpu.memory_space<vmem>>) attributes {dimension_semantics = [#tpu.dimension_semantics<parallel>], iteration_bounds = array<i64: 1>, scalar_prefetch = 0 : i64, scratch_operands = 0 : i64, tpu.core_type = #tpu.core_type<tc>, window_params = [{transform_indices = @transform_0, window_bounds = array<i64: 3, 128>}, {transform_indices = @transform_1, window_bounds = array<i64: 4, 128>}, {pipeline_mode = #tpu.pipeline_mode<synchronous>, transform_indices = @transform_2, window_bounds = array<i64: 32, 60>}, {pipeline_mode = #tpu.pipeline_mode<synchronous>, transform_indices = @transform_3, window_bounds = array<i64: 32, 32>}, {pipeline_mode = #tpu.pipeline_mode<synchronous>, transform_indices = @transform_4, window_bounds = array<i64: 32, 1>}, {pipeline_mode = #tpu.pipeline_mode<synchronous>, transform_indices = @transform_5, window_bounds = array<i64: 16, 32>}, {pipeline_mode = #tpu.pipeline_mode<synchronous>, transform_indices = @transform_6, window_bounds = array<i64: 16, 1>}, {pipeline_mode = #tpu.pipeline_mode<synchronous>, transform_indices = @transform_7, window_bounds = array<i64: 4, 1>}, {pipeline_mode = #tpu.pipeline_mode<synchronous>, transform_indices = @transform_8, window_bounds = array<i64: 16, 1>}, {pipeline_mode = #tpu.pipeline_mode<synchronous>, transform_indices = @transform_9, window_bounds = array<i64: 1, 1>}, {transform_indices = @transform_10, window_bounds = array<i64: 1, 128>}]} {
    %c0 = arith.constant 0 : index
    %c0_0 = arith.constant 0 : index
    %0 = vector.load %arg1[%c0, %c0_0] : memref<3x128xi32, #tpu.memory_space<vmem>>, vector<3x128xi32>
    %1 = tpu.iota {dimensions = array<i32: 0>} : vector<60x128xi32>
    %cst = arith.constant 0.000000e+00 : f32
    %2 = vector.broadcast %cst : f32 to vector<60x128xf32>
    %3 = vector.extract_strided_slice %0 {offsets = [0, 0], sizes = [1, 128], strides = [1, 1]} : vector<3x128xi32> to vector<1x128xi32>
    %4 = vector.shape_cast %3 : vector<1x128xi32> to vector<128xi32>
    %5 = vector.shape_cast %4 : vector<128xi32> to vector<1x128xi32>
    %6 = vector.broadcast %5 : vector<1x128xi32> to vector<60x128xi32>
    %7 = arith.cmpi eq, %1, %6 : vector<60x128xi32>
    %8 = arith.extui %7 : vector<60x128xi1> to vector<60x128xi32>
    %9 = arith.sitofp %8 : vector<60x128xi32> to vector<60x128xf32>
    %10 = arith.addf %2, %9 : vector<60x128xf32>
    %11 = vector.extract_strided_slice %0 {offsets = [1, 0], sizes = [1, 128], strides = [1, 1]} : vector<3x128xi32> to vector<1x128xi32>
    %12 = vector.shape_cast %11 : vector<1x128xi32> to vector<128xi32>
    %13 = vector.shape_cast %12 : vector<128xi32> to vector<1x128xi32>
    %14 = vector.broadcast %13 : vector<1x128xi32> to vector<60x128xi32>
    %15 = arith.cmpi eq, %1, %14 : vector<60x128xi32>
    %16 = arith.extui %15 : vector<60x128xi1> to vector<60x128xi32>
    %17 = arith.sitofp %16 : vector<60x128xi32> to vector<60x128xf32>
    %18 = arith.addf %10, %17 : vector<60x128xf32>
    %19 = vector.extract_strided_slice %0 {offsets = [2, 0], sizes = [1, 128], strides = [1, 1]} : vector<3x128xi32> to vector<1x128xi32>
    %20 = vector.shape_cast %19 : vector<1x128xi32> to vector<128xi32>
    %21 = vector.shape_cast %20 : vector<128xi32> to vector<1x128xi32>
    %22 = vector.broadcast %21 : vector<1x128xi32> to vector<60x128xi32>
    %23 = arith.cmpi eq, %1, %22 : vector<60x128xi32>
    %24 = arith.extui %23 : vector<60x128xi1> to vector<60x128xi32>
    %25 = arith.sitofp %24 : vector<60x128xi32> to vector<60x128xf32>
    %26 = arith.addf %18, %25 : vector<60x128xf32>
    %c0_1 = arith.constant 0 : index
    %c0_2 = arith.constant 0 : index
    %27 = vector.load %arg3[%c0_1, %c0_2] : memref<32x60xf32, #tpu.memory_space<vmem>>, vector<32x60xf32>
    %cst_3 = arith.constant dense<0.000000e+00> : vector<32x128xf32>
    %28 = tpu.matmul %27, %26, %cst_3 {dimension_numbers = #tpu.dot_dimension_numbers<[1], [0], [0], [1], [0, 0, 1, 1], [], []>} : vector<32x60xf32>, vector<60x128xf32>, vector<32x128xf32> -> vector<32x128xf32>
    %c0_4 = arith.constant 0 : index
    %c0_5 = arith.constant 0 : index
    %29 = vector.load %arg4[%c0_4, %c0_5] : memref<32x32xf32, #tpu.memory_space<vmem>>, vector<32x32xf32>
    %c0_6 = arith.constant 0 : index
    %c0_7 = arith.constant 0 : index
    %30 = vector.load %arg5[%c0_6, %c0_7] : memref<32x1xf32, #tpu.memory_space<vmem>>, vector<32x1xf32>
    %cst_8 = arith.constant dense<0.000000e+00> : vector<32x128xf32>
    %31 = tpu.matmul %29, %28, %cst_8 {dimension_numbers = #tpu.dot_dimension_numbers<[1], [0], [0], [1], [0, 0, 1, 1], [], []>} : vector<32x32xf32>, vector<32x128xf32>, vector<32x128xf32> -> vector<32x128xf32>
    %32 = vector.broadcast %30 : vector<32x1xf32> to vector<32x128xf32>
    %33 = arith.addf %31, %32 : vector<32x128xf32>
    %cst_9 = arith.constant 0.000000e+00 : f32
    %34 = vector.broadcast %cst_9 : f32 to vector<32x128xf32>
    %35 = arith.maximumf %33, %34 : vector<32x128xf32>
    %c0_10 = arith.constant 0 : index
    %c0_11 = arith.constant 0 : index
    %36 = vector.load %arg6[%c0_10, %c0_11] : memref<16x32xf32, #tpu.memory_space<vmem>>, vector<16x32xf32>
    %c0_12 = arith.constant 0 : index
    %c0_13 = arith.constant 0 : index
    %37 = vector.load %arg7[%c0_12, %c0_13] : memref<16x1xf32, #tpu.memory_space<vmem>>, vector<16x1xf32>
    %cst_14 = arith.constant dense<0.000000e+00> : vector<16x128xf32>
    %38 = tpu.matmul %36, %35, %cst_14 {dimension_numbers = #tpu.dot_dimension_numbers<[1], [0], [0], [1], [0, 0, 1, 1], [], []>} : vector<16x32xf32>, vector<32x128xf32>, vector<16x128xf32> -> vector<16x128xf32>
    %39 = vector.broadcast %37 : vector<16x1xf32> to vector<16x128xf32>
    %40 = arith.addf %38, %39 : vector<16x128xf32>
    %cst_15 = arith.constant 0.000000e+00 : f32
    %41 = vector.broadcast %cst_15 : f32 to vector<16x128xf32>
    %42 = arith.maximumf %40, %41 : vector<16x128xf32>
    %c0_16 = arith.constant 0 : index
    %c0_17 = arith.constant 0 : index
    %43 = vector.load %arg2[%c0_16, %c0_17] : memref<4x128xf32, #tpu.memory_space<vmem>>, vector<4x128xf32>
    %c0_18 = arith.constant 0 : index
    %c0_19 = arith.constant 0 : index
    %44 = vector.load %arg8[%c0_18, %c0_19] : memref<4x1xf32, #tpu.memory_space<vmem>>, vector<4x1xf32>
    %45 = vector.broadcast %44 : vector<4x1xf32> to vector<4x128xf32>
    %46 = arith.mulf %43, %45 : vector<4x128xf32>
    %cst_20 = arith.constant dense<0.000000e+00> : vector<128xf32>
    %47 = vector.multi_reduction <add>, %46, %cst_20 [0] : vector<4x128xf32> to vector<128xf32>
    %48 = vector.shape_cast %47 : vector<128xf32> to vector<1x128xf32>
    %c0_21 = arith.constant 0 : index
    %c0_22 = arith.constant 0 : index
    %49 = vector.load %arg9[%c0_21, %c0_22] : memref<16x1xf32, #tpu.memory_space<vmem>>, vector<16x1xf32>
    %50 = vector.broadcast %49 : vector<16x1xf32> to vector<16x128xf32>
    %51 = arith.mulf %42, %50 : vector<16x128xf32>
    %cst_23 = arith.constant dense<0.000000e+00> : vector<128xf32>
    %52 = vector.multi_reduction <add>, %51, %cst_23 [0] : vector<16x128xf32> to vector<128xf32>
    %53 = vector.shape_cast %52 : vector<128xf32> to vector<1x128xf32>
    %54 = arith.addf %48, %53 : vector<1x128xf32>
    %c0_24 = arith.constant 0 : index
    %c0_25 = arith.constant 0 : index
    %55 = vector.load %arg10[%c0_24, %c0_25] : memref<1x1xf32, #tpu.memory_space<vmem>>, vector<1x1xf32>
    %56 = vector.broadcast %55 : vector<1x1xf32> to vector<1x128xf32>
    %57 = arith.addf %54, %56 : vector<1x128xf32>
    %58 = arith.negf %57 : vector<1x128xf32>
    %59 = math.exp %58 : vector<1x128xf32>
    %cst_26 = arith.constant 1.000000e+00 : f32
    %60 = vector.broadcast %cst_26 : f32 to vector<1x128xf32>
    %61 = arith.addf %60, %59 : vector<1x128xf32>
    %62 = arith.divf %60, %61 : vector<1x128xf32>
    %c0_27 = arith.constant 0 : index
    %c0_28 = arith.constant 0 : index
    %63 = vector.load %arg11[%c0_27, %c0_28] : memref<1x128xf32, #tpu.memory_space<vmem>>, vector<1x128xf32>
    tpu.vector_store %arg11[%c0_27, %c0_28], %62 {strides = array<i32>} : memref<1x128xf32, #tpu.memory_space<vmem>>, vector<1x128xf32>,
    return
  }
  func.func @transform_0(%arg0: i32) -> (i32, i32) {
    %c0_i32 = arith.constant 0 : i32
    %c0_i32_0 = arith.constant 0 : i32
    return %c0_i32, %arg0 : i32, i32
  }
  func.func @transform_1(%arg0: i32) -> (i32, i32) {
    %c0_i32 = arith.constant 0 : i32
    %c0_i32_0 = arith.constant 0 : i32
    return %c0_i32, %arg0 : i32, i32
  }
  func.func @transform_2(%arg0: i32) -> (i32, i32) {
    %c0_i32 = arith.constant 0 : i32
    %c0_i32_0 = arith.constant 0 : i32
    %c0_i32_1 = arith.constant 0 : i32
    return %c0_i32, %c0_i32_0 : i32, i32
  }
  func.func @transform_3(%arg0: i32) -> (i32, i32) {
    %c0_i32 = arith.constant 0 : i32
    %c0_i32_0 = arith.constant 0 : i32
    %c0_i32_1 = arith.constant 0 : i32
    return %c0_i32, %c0_i32_0 : i32, i32
  }
  func.func @transform_4(%arg0: i32) -> (i32, i32) {
    %c0_i32 = arith.constant 0 : i32
    %c0_i32_0 = arith.constant 0 : i32
    %c0_i32_1 = arith.constant 0 : i32
    return %c0_i32, %c0_i32_0 : i32, i32
  }
  func.func @transform_5(%arg0: i32) -> (i32, i32) {
    %c0_i32 = arith.constant 0 : i32
    %c0_i32_0 = arith.constant 0 : i32
    %c0_i32_1 = arith.constant 0 : i32
    return %c0_i32, %c0_i32_0 : i32, i32
  }
  func.func @transform_6(%arg0: i32) -> (i32, i32) {
    %c0_i32 = arith.constant 0 : i32
    %c0_i32_0 = arith.constant 0 : i32
    %c0_i32_1 = arith.constant 0 : i32
    return %c0_i32, %c0_i32_0 : i32, i32
  }
  func.func @transform_7(%arg0: i32) -> (i32, i32) {
    %c0_i32 = arith.constant 0 : i32
    %c0_i32_0 = arith.constant 0 : i32
    %c0_i32_1 = arith.constant 0 : i32
    return %c0_i32, %c0_i32_0 : i32, i32
  }
  func.func @transform_8(%arg0: i32) -> (i32, i32) {
    %c0_i32 = arith.constant 0 : i32
    %c0_i32_0 = arith.constant 0 : i32
    %c0_i32_1 = arith.constant 0 : i32
    return %c0_i32, %c0_i32_0 : i32, i32
  }
  func.func @transform_9(%arg0: i32) -> (i32, i32) {
    %c0_i32 = arith.constant 0 : i32
    %c0_i32_0 = arith.constant 0 : i32
    %c0_i32_1 = arith.constant 0 : i32
    return %c0_i32, %c0_i32_0 : i32, i32
  }
  func.func @transform_10(%arg0: i32) -> (i32, i32) {
    %c0_i32 = arith.constant 0 : i32
    %c0_i32_0 = arith.constant 0 : i32
    return %c0_i32, %arg0 : i32, i32
  }
}

</mosaic_0001>

<bundles_post_ra>
// kernel: tpu_custom_call.1
= control target key start
LH: loop header
LB: loop body
LE: loop exit
PB: predicated region body
PF: predicated region fallthrough
CT: control target
= control target key end

     0   :  { %s1063_s0 = inlined_call_operand.hbm [shape: s32[3,128], index: 0, kind: input, shape index: {}]   ;;  %s1064_s1 = inlined_call_operand.hbm [shape: f32[4,128], index: 1, kind: input, shape index: {}]   ;;  %s1065_s2 = inlined_call_operand.vmem [shape: f32[32,60], index: 2, kind: input, shape index: {}]   ;;  %s1066_s3 = inlined_call_operand.vmem [shape: f32[32,32], index: 3, kind: input, shape index: {}]   ;;  %s1067_s4 = inlined_call_operand.vmem [shape: f32[32,1], index: 4, kind: input, shape index: {}]   ;;  %s1068_s5 = inlined_call_operand.vmem [shape: f32[16,32], index: 5, kind: input, shape index: {}]   ;;  %s1069_s6 = inlined_call_operand.vmem [shape: f32[16,1], index: 6, kind: input, shape index: {}]   ;;  %s1070_s7 = inlined_call_operand.vmem [shape: f32[4,1], index: 7, kind: input, shape index: {}]   ;;  %s1071_s8 = inlined_call_operand.vmem [shape: f32[16,1], index: 8, kind: input, shape index: {}]   ;;  %s1072_s9 = inlined_call_operand.<no memory space> [shape: f32[1,1], index: 9, kind: input, shape index: {}]   ;;  %s1073_s10 = inlined_call_operand.hbm [shape: f32[1,128], index: 10, kind: output, shape index: {}]  }
   0x1   :  { %v15_v0 = vstv %s1072_s9 }
   0x2   :  { %16 = vst [vmem:[#allocation2] sm:$0x1] %v15_v0 }
   0x3   :  { %17 = vsyncpa [#allocation4], 0 }
   0x4   :  { %18 = vsyncpa [#allocation7], 0 }
   0x5   :  { %19 = vsyncpa [#allocation5], 0  ;;  %s811_s15 = smov [#allocation3]   ;;  %s812_s17 = smov [#allocation6]  }
   0x6   :  { %s26_s16 = sshll.u32 %s811_s15, 4  ;;  %s36_s18 = sshll.u32 %s812_s17, 4  ;;  %s27_s16 = int_to_ptr.vmem [resolvable:$true] %s26_s16  ;;  %s37_s18 = int_to_ptr.vmem [resolvable:$true] %s36_s18 }
   0x7   :  { %s739_s21 = scalar_lea.hbm %s1063_s0, 64 }
   0x8   :  { %p740_p0 = scmp.ne.s32.totalorder %s1063_s0, %s739_s21  ;;  %p743_p1 = scmp.lt.u32.totalorder %s739_s21, %s1063_s0 }
   0xa   :  { %p745_p2 = pnand %p743_p1, %p740_p0 }
   0xc   :  { %748 = shalt.err (!%p745_p2)
}
   0xd   :  { %s749_s25 = scalar_lea.vmem %s27_s16, 64  ;;  %p754_p4 = scmp.lt.s32.totalorder %s27_s16, %s27_s16 }
   0xe   :  { %p750_p3 = scmp.ne.s32.totalorder %s27_s16, %s749_s25  ;;  %p755_p5 = scmp.lt.s32.totalorder %s749_s25, %s749_s25 }
  0x10   :  { %p756_p6 = por %p755_p5, %p754_p4 }
  0x12   :  { %p757_p7 = pnand %p756_p6, %p750_p3 }
  0x14   :  { %760 = shalt.err (!%p757_p7)
}
  0x15   :  { %29 = dma.hbm_to_vmem [thread:$0]  %s1063_s0, 64, %s27_s16, [#allocation4]  }
  0x16   :  { %s761_s30 = scalar_lea.hbm %s1064_s1, 64 }
  0x17   :  { %p762_p8 = scmp.ne.s32.totalorder %s1064_s1, %s761_s30  ;;  %p765_p9 = scmp.lt.u32.totalorder %s761_s30, %s1064_s1 }
  0x19   :  { %p767_p10 = pnand %p765_p9, %p762_p8 }
  0x1b   :  { %770 = shalt.err (!%p767_p10)
}
  0x1c   :  { %s771_s15 = scalar_lea.vmem %s37_s18, 64  ;;  %p776_p12 = scmp.lt.s32.totalorder %s37_s18, %s37_s18 }
  0x1d   :  { %p772_p11 = scmp.ne.s32.totalorder %s37_s18, %s771_s15  ;;  %p777_p13 = scmp.lt.s32.totalorder %s771_s15, %s771_s15 }
  0x1f   :  { %p778_p0 = por %p777_p13, %p776_p12 }
  0x21   :  { %p779_p1 = pnand %p778_p0, %p772_p11 }
  0x23   :  { %782 = shalt.err (!%p779_p1)
}
  0x24   :  { %39 = dma.hbm_to_vmem [thread:$0]  %s1064_s1, 64, %s37_s18, [#allocation7]  }
  0x25   :  { %805 = dma.done.wait [#allocation4], 64  }
  0x26   :  { %806 = vsyncadd [#allocation4], 4294967232 }
  0x27   :  { %807 = dma.done.wait [#allocation7], 64  }
  0x28   :  { %808 = vsyncadd [#allocation7], 4294967232  ;;  %v63_v1 = vlaneseq  ;;  %vm184_vm0 = vcmask 490496   ;;  %v62_v7 = vld [vmem:[#allocation3] sm:$0x7]  ;;  %v813_v18 = vmov 0.0  }
  0x29   :  { %v180_v9 = vld [vmem:[%s1065_s2] sm:$0xff]  ;;  %vm197_vm14 = vcmask 1043456   ;;  %v181_v63 = vld [vmem:[%s1065_s2 + $0x8] sm:$0xff]  ;;  %v182_v0 = vld [vmem:[%s1065_s2 + $0x10] sm:$0xff] }
  0x2a   :  { %v899_v2 = vshrl.u32 %v63_v1, 7  ;;  %662 = vmatprep.mubr.msk.f32.mxu0 %vm184_vm0, %v180_v9  ;;  %v183_v1 = vld [vmem:[%s1065_s2 + $0x18] sm:$0xff] }
  0x2b   :  { %v293_v9 = vld [vmem:[%s1067_s4 + $0x18] sm:$0xff] }
  0x2c   :  { %v74_v3 = vsub.s32 0, %v899_v2  ;;  %v110_v4 = vsub.s32 1, %v899_v2  ;;  %v146_v5 = vsub.s32 2, %v899_v2  ;;  %v65_v6 = vadd.s32 8, %v899_v2 }
  0x2d   :  { %v66_v8 = vadd.s32 16, %v899_v2  ;;  %v67_v13 = vadd.s32 24, %v899_v2  ;;  %v68_v14 = vadd.s32 32, %v899_v2  ;;  %v69_v15 = vadd.s32 40, %v899_v2 }
  0x2e   :  { %v911_v10 = vrot.slane %v62_v7, %v74_v3  ;;  %v913_v11 = vrot.slane %v62_v7, %v110_v4  ;;  %v915_v12 = vrot.slane %v62_v7, %v146_v5  ;;  %v922_v16 = vadd.s32 48, %v899_v2  ;;  %v286_v4 = vld [vmem:[%s1066_s3] sm:$0xff]  ;;  %v292_v7 = vld [vmem:[%s1067_s4 + $0x10] sm:$0xff] }
  0x2f   :  { %v925_v17 = vadd.s32 56, %v899_v2  ;;  %v290_v5 = vld [vmem:[%s1067_s4] sm:$0xff] }
  0x30   :  { %vm76_vm1 = vcmp.eq.s32.totalorder %v899_v2, %v911_v10  ;;  %vm77_vm2 = vcmp.eq.s32.totalorder %v65_v6, %v911_v10  ;;  %vm112_vm3 = vcmp.eq.s32.totalorder %v899_v2, %v913_v11  ;;  %vm113_vm4 = vcmp.eq.s32.totalorder %v65_v6, %v913_v11 }
  0x31   :  { %v584_v19 = vsel %vm76_vm1, 1.0, %v813_v18  ;;  %v585_v20 = vsel %vm77_vm2, 1.0, %v813_v18  ;;  %v592_v21 = vsel %vm112_vm3, 1.0, %v813_v18  ;;  %v593_v22 = vsel %vm113_vm4, 1.0, %v813_v18 }
  0x32   :  { %v136_v23 = vadd.f32 %v592_v21, %v584_v19  ;;  %v137_v24 = vadd.f32 %v593_v22, %v585_v20  ;;  %vm148_vm5 = vcmp.eq.s32.totalorder %v899_v2, %v915_v12  ;;  %vm149_vm6 = vcmp.eq.s32.totalorder %v65_v6, %v915_v12  ;;  %v287_v22 = vld [vmem:[%s1066_s3 + $0x8] sm:$0xff] }
  0x33   :  { %v600_v25 = vsel %vm148_vm5, 1.0, %v813_v18  ;;  %v601_v26 = vsel %vm149_vm6, 1.0, %v813_v18  ;;  %vm78_vm7 = vcmp.eq.s32.totalorder %v66_v8, %v911_v10  ;;  %vm79_vm8 = vcmp.eq.s32.totalorder %v67_v13, %v911_v10 }
  0x34   :  { %v172_v27 = vadd.f32 %v600_v25, %v136_v23  ;;  %v173_v28 = vadd.f32 %v601_v26, %v137_v24  ;;  %v586_v29 = vsel %vm78_vm7, 1.0, %v813_v18  ;;  %v587_v30 = vsel %vm79_vm8, 1.0, %v813_v18  ;;  %v288_v23 = vld [vmem:[%s1066_s3 + $0x10] sm:$0xff]  ;;  %v289_v24 = vld [vmem:[%s1066_s3 + $0x18] sm:$0xff]  ;;  %v416_v25 = vld [vmem:[%s1068_s5] sm:$0xff] }
  0x35   :  { %vm114_vm9 = vcmp.eq.s32.totalorder %v66_v8, %v913_v11  ;;  %vm115_vm10 = vcmp.eq.s32.totalorder %v67_v13, %v913_v11  ;;  %vm150_vm11 = vcmp.eq.s32.totalorder %v66_v8, %v915_v12  ;;  %vm151_vm12 = vcmp.eq.s32.totalorder %v67_v13, %v915_v12  ;;  %v291_v8 = vld [vmem:[%s1067_s4 + $0x8] sm:$0xff] }
  0x36   :  { %v693_v31 = vpack.c.bf16 %v173_v28, %v172_v27  ;;  %v594_v32 = vsel %vm114_vm9, 1.0, %v813_v18  ;;  %v595_v33 = vsel %vm115_vm10, 1.0, %v813_v18  ;;  %v602_v34 = vsel %vm150_vm11, 1.0, %v813_v18  ;;  %v529_v13 = vld [vmem:[%s1071_s8 + $0x8] sm:$0xff] }
  0x37   :  { %v138_v35 = vadd.f32 %v594_v32, %v586_v29  ;;  %v139_v36 = vadd.f32 %v595_v33, %v587_v30  ;;  %v603_v37 = vsel %vm151_vm12, 1.0, %v813_v18  ;;  %vm80_vm13 = vcmp.eq.s32.totalorder %v68_v14, %v911_v10 }
  0x38   :  { %694 = vmatprep.subr.bf16.mxu0 %v693_v31  ;;  %vm81_vm15 = vcmp.eq.s32.totalorder %v69_v15, %v911_v10  ;;  %v588_v38 = vsel %vm80_vm13, 1.0, %v813_v18  ;;  %vm116_vm1 = vcmp.eq.s32.totalorder %v68_v14, %v913_v11  ;;  %vm117_vm2 = vcmp.eq.s32.totalorder %v69_v15, %v913_v11 }
  0x39   :  { %696 = vmatpush3.bf16.msra.mxu0 %v693_v31  ;;  %v174_v39 = vadd.f32 %v602_v34, %v138_v35  ;;  %v175_v40 = vadd.f32 %v603_v37, %v139_v36  ;;  %v589_v41 = vsel %vm81_vm15, 1.0, %v813_v18  ;;  %v596_v42 = vsel %vm116_vm1, 1.0, %v813_v18 }
  0x3a   :  { %v597_v43 = vsel %vm117_vm2, 1.0, %v813_v18  ;;  %v140_v44 = vadd.f32 %v596_v42, %v588_v38  ;;  %vm152_vm3 = vcmp.eq.s32.totalorder %v68_v14, %v915_v12  ;;  %vm153_vm4 = vcmp.eq.s32.totalorder %v69_v15, %v915_v12  ;;  %v514_v14 = vld [vmem:[%s1070_s7] sm:$0xf] }
  0x3b   :  { %v697_v45 = vpack.c.bf16 %v175_v40, %v174_v39  ;;  %v141_v46 = vadd.f32 %v597_v43, %v589_v41  ;;  %v604_v47 = vsel %vm152_vm3, 1.0, %v813_v18  ;;  %v605_v48 = vsel %vm153_vm4, 1.0, %v813_v18  ;;  %v550_v15 = vld [vmem:[#allocation2] sm:$0x1] }
  0x3c   :  { %v176_v49 = vadd.f32 %v604_v47, %v140_v44  ;;  %vm82_vm5 = vcmp.eq.s32.totalorder %v922_v16, %v911_v10  ;;  %vm83_vm6 = vcmp.eq.s32.totalorder %v925_v17, %v911_v10  ;;  %vm118_vm7 = vcmp.eq.s32.totalorder %v922_v16, %v913_v11  ;;  %v418_v10 = vld [vmem:[%s1069_s6] sm:$0xff]  ;;  %v417_v44 = vld [vmem:[%s1068_s5 + $0x8] sm:$0xff]  ;;  %s816_s5 = smov [#allocation8]  }
  0x3d   :  { %698 = vmatprep.subr.bf16.mxu0 %v697_v45  ;;  %v177_v50 = vadd.f32 %v605_v48, %v141_v46  ;;  %v590_v51 = vsel %vm82_vm5, 1.0, %v813_v18  ;;  %v591_v52 = vsel %vm83_vm6, 1.0, %v813_v18  ;;  %vm119_vm8 = vcmp.eq.s32.totalorder %v925_v17, %v913_v11  ;;  %v419_v11 = vld [vmem:[%s1069_s6 + $0x8] sm:$0xff]  ;;  %s574_s9 = sshll.u32 %s816_s5, 4  ;;  %s575_s9 = int_to_ptr.vmem [resolvable:$true] %s574_s9 }
  0x3e   :  { %700 = vmatpush3.bf16.msra.mxu0 %v697_v45  ;;  %v598_v53 = vsel %vm118_vm7, 1.0, %v813_v18  ;;  %v599_v54 = vsel %vm119_vm8, 1.0, %v813_v18  ;;  %vm154_vm9 = vcmp.eq.s32.totalorder %v922_v16, %v915_v12  ;;  %vm155_vm10 = vcmp.eq.s32.totalorder %v925_v17, %v915_v12  ;;  %v528_v12 = vld [vmem:[%s1071_s8] sm:$0xff]  ;;  %s783_s25 = scalar_lea.vmem %s575_s9, 16  ;;  %s787_s26 = scalar_lea.vmem %s575_s9, 32 }
  0x3f   :  { %v701_v55 = vpack.c.bf16 %v177_v50, %v176_v49  ;;  %v142_v56 = vadd.f32 %v598_v53, %v590_v51  ;;  %v143_v57 = vadd.f32 %v599_v54, %v591_v52  ;;  %v606_v58 = vsel %vm154_vm9, 1.0, %v813_v18  ;;  %v513_v47 = vld [vmem:[#allocation6] sm:$0xf]  ;;  %p784_p2 = scmp.ne.s32.totalorder %s575_s9, %s783_s25  ;;  %p788_p3 = scmp.lt.s32.totalorder %s575_s9, %s575_s9 }
  0x40   :  { %v607_v59 = vsel %vm155_vm10, 1.0, %v813_v18  ;;  %vm814_vm11 = vmmov 1   ;;  %vm314_vm13 = vcmask 261120   ;;  %v815_v6 = vmov 0   ;;  %p789_p4 = scmp.lt.s32.totalorder %s787_s26, %s783_s25 }
  0x41   :  { %702 = vmatprep.subr.bf16.mxu0 %v701_v55  ;;  %v178_v60 = vadd.f32 %v606_v58, %v142_v56  ;;  %v179_v61 = vadd.f32 %v607_v59, %v143_v57  ;;  %vm706_vm12 = vmpackc.low %vm197_vm14, %vm814_vm11  ;;  %676 = vmatprep.mubr.msk.f32.mxu1 %vm314_vm13, %v286_v4 }
  0x42   :  { %704 = vmatpush3.bf16.msra.mxu0 %v701_v55  ;;  %733 = vset.pattern.permute.xlu0 %v815_v6  ;;  %p790_p5 = por %p789_p4, %p788_p3 }
  0x43   :  { %v705_v62 = vpack.c.bf16 %v179_v61, %v178_v60  ;;  %734 = vset.pattern.permute.xlu1 %v815_v6  ;;  %296 = vperm.xlu0 %733, %v290_v5  }
  0x44   :  { %306 = vperm.xlu1 %734, %v292_v7   ;;  %p791_p6 = pnand %p790_p5, %p784_p2 }
  0x45   :  { %707 = vmatprep.subr.msk.bf16.mxu0 %vm706_vm12, %v705_v62 }
  0x46   :  { %710 = vmatpush3.bf16.msk.msra.mxu0 %vm706_vm12, %v705_v62 }
  0x47   :  { %301 = vperm.xlu0 %733, %v291_v8  }
  0x48   :  { %311 = vperm.xlu1 %734, %v293_v9  }
  0x49   :  { %663 = vmatmul.mubr.msk.f32.vlgmr.msra.gmra.mrb[0].mxu0 %vm184_vm0, %v181_v63 }
  0x4a   :  { %665 = vmatprep.mubr.msk.f32.mxu0 %vm184_vm0, %v182_v0 }
  0x4b   :  { %422 = vperm.xlu0 %733, %v418_v10  }
  0x4c   :  { %427 = vperm.xlu1 %734, %v419_v11  }
  0x4d   :  { %666 = vmatmul.mubr.msk.f32.gmra.mrb[2].mxu0 %vm184_vm0, %v183_v1 }
  0x4f   :  { %532 = vperm.xlu0 %733, %v528_v12  }
  0x50   :  { %537 = vperm.xlu1 %734, %v529_v13  }
  0x53   :  { %517 = vperm.xlu0 %733, %v514_v14  }
  0x54   :  { %553 = vperm.xlu1 %734, %v550_v15  }
  0xc2   :  { %v297_v26 = vpop.permute.xlu0 %296 }
  0xc3   :  { %v307_v27 = vpop.permute.xlu1 %306 }
  0xc6   :  { %v302_v28 = vpop.permute.xlu0 %301 }
  0xc7   :  { %v312_v34 = vpop.permute.xlu1 %311 }
  0xca   :  { %v423_v45 = vpop.permute.xlu0 %422 }
  0xcb   :  { %v428_v51 = vpop.permute.xlu1 %427 }
  0xce   :  { %v533_v46 = vpop.permute.xlu0 %532 }
  0xcf   :  { %v538_v59 = vpop.permute.xlu1 %537 }
  0xd2   :  { %v518_v48 = vpop.permute.xlu0 %517 }
  0xd3   :  { %v520_v49 = vmul.f32 %v518_v48, %v513_v47  ;;  %v554_v10 = vpop.permute.xlu1 %553 }
  0xd4   :  { %v559_v13 = vrot.slane %v554_v10, %v74_v3 }
  0xd5   :  { %v521_v50 = vsel %vm197_vm14, %v520_v49, 0.0 }
  0xd6   :  { %v522_v52 = vrot.slane %v521_v50, 4 }
  0xd8   :  { %v523_v58 = vadd.f32 %v522_v52, %v521_v50 }
  0xda   :  { %v524_v63 = vrot.slane %v523_v58, 2 }
  0xdc   :  { %v525_v4 = vadd.f32 %v524_v63, %v523_v58 }
  0xde   :  { %v526_v7 = vrot.slane %v525_v4, 1 }
  0xe0   :  { %v527_v11 = vadd.f32 %v526_v7, %v525_v4 }
 0x11c   :  { %v664_v16 = vpop.f32.mrb[0].mxu0 }
 0x11d   :  { %v267_v17 = vpop.f32.mrb[1].mxu0 }
 0x11e   :  { %v711_v18 = vpack.c.bf16 %v664_v16, %v267_v17 }
 0x120   :  { %v667_v19 = vpop.f32.mrb[2].mxu0  ;;  %712 = vmatprep.subr.bf16.mxu1 %v711_v18 }
 0x121   :  { %v277_v20 = vpop.f32.mrb[3].mxu0  ;;  %714 = vmatpush3.bf16.msra.mxu1 %v711_v18 }
 0x122   :  { %v715_v21 = vpack.c.bf16 %v667_v19, %v277_v20 }
 0x124   :  { %716 = vmatprep.subr.bf16.mxu1 %v715_v21 }
 0x125   :  { %718 = vmatpush3.bf16.msra.mxu1 %v715_v21 }
 0x128   :  { %677 = vmatmul.mubr.msk.f32.vlgmr.msra.gmra.mrb[0].mxu1 %vm314_vm13, %v287_v22 }
 0x129   :  { %679 = vmatprep.mubr.msk.f32.mxu1 %vm314_vm13, %v288_v23 }
 0x12c   :  { %680 = vmatmul.mubr.msk.f32.gmra.mrb[2].mxu1 %vm314_vm13, %v289_v24 }
 0x12d   :  { %690 = vmatprep.mubr.msk.f32.mxu1 %vm314_vm13, %v416_v25 }
 0x1fb   :  { %v678_v29 = vpop.f32.mrb[0].mxu1 }
 0x1fc   :  { %v399_v30 = vadd.f32 %v678_v29, %v302_v28  ;;  %v393_v31 = vpop.f32.mrb[1].mxu1 }
 0x1fd   :  { %v394_v32 = vadd.f32 %v393_v31, %v297_v26 }
 0x1fe   :  { %v413_v33 = vmax.f32 %v399_v30, 0.0 }
 0x1ff   :  { %v412_v35 = vmax.f32 %v394_v32, 0.0  ;;  %v681_v36 = vpop.f32.mrb[2].mxu1 }
 0x200   :  { %v409_v37 = vadd.f32 %v681_v36, %v312_v34  ;;  %v403_v38 = vpop.f32.mrb[3].mxu1 }
 0x201   :  { %v719_v39 = vpack.c.bf16 %v413_v33, %v412_v35  ;;  %v404_v40 = vadd.f32 %v403_v38, %v307_v27 }
 0x202   :  { %v415_v41 = vmax.f32 %v409_v37, 0.0 }
 0x203   :  { %v414_v42 = vmax.f32 %v404_v40, 0.0  ;;  %720 = vmatprep.subr.bf16.mxu1 %v719_v39 }
 0x204   :  { %722 = vmatpush3.bf16.msra.mxu1 %v719_v39 }
 0x205   :  { %v723_v43 = vpack.c.bf16 %v415_v41, %v414_v42 }
 0x207   :  { %724 = vmatprep.subr.bf16.mxu1 %v723_v43 }
 0x208   :  { %726 = vmatpush3.bf16.msra.mxu1 %v723_v43 }
 0x20b   :  { %691 = vmatmul.mubr.msk.f32.vlgmr.msra.gmra.mrb[4].mxu1 %vm314_vm13, %v417_v44 }
 0x2de   :  { %v692_v53 = vpop.f32.mrb[4].mxu1 }
 0x2df   :  { %v508_v54 = vadd.f32 %v692_v53, %v428_v51  ;;  %v502_v55 = vpop.f32.mrb[5].mxu1 }
 0x2e0   :  { %v503_v56 = vadd.f32 %v502_v55, %v423_v45 }
 0x2e1   :  { %v512_v57 = vmax.f32 %v508_v54, 0.0 }
 0x2e2   :  { %v511_v60 = vmax.f32 %v503_v56, 0.0 }
 0x2e3   :  { %v541_v61 = vmul.f32 %v538_v59, %v512_v57 }
 0x2e4   :  { %v540_v62 = vmul.f32 %v533_v46, %v511_v60 }
 0x2e6   :  { %v542_v0 = vadd.f32 %v541_v61, %v540_v62 }
 0x2e8   :  { %v543_v1 = vrot.slane %v542_v0, 4 }
 0x2ea   :  { %v544_v5 = vadd.f32 %v543_v1, %v542_v0 }
 0x2ec   :  { %v545_v6 = vrot.slane %v544_v5, 2 }
 0x2ee   :  { %v546_v8 = vadd.f32 %v545_v6, %v544_v5 }
 0x2f0   :  { %v547_v9 = vrot.slane %v546_v8, 1 }
 0x2f2   :  { %v548_v12 = vadd.f32 %v547_v9, %v546_v8 }
 0x2f4   :  { %v549_v14 = vadd.f32 %v548_v12, %v527_v11 }
 0x2f6   :  { %v560_v15 = vadd.f32 %v559_v13, %v549_v14 }
 0x2f8   :  { %v619_v16 = vmul.f32 -1.442695, %v560_v15 }
 0x2fa   :  { %735 = vpow2.f32 %v619_v16 }
 0x304   :  { %v736_v17 = vpop.eup %735 }
 0x305   :  { %v564_v18 = vadd.f32 1.0, %v736_v17 }
 0x307   :  { %737 = vrcp.f32 %v564_v18 }
 0x311   :  { %v738_v19 = vpop.eup %737 }
 0x312   :  { %567 = vst [vmem:[#allocation8] sm:$0x1] %v738_v19 }
 0x313   :  { %794 = shalt.err (!%p791_p6)
}
 0x314   :  { %s795_s2 = scalar_lea.hbm %s1073_s10, 16 }
 0x315   :  { %p796_p7 = scmp.ne.s32.totalorder %s1073_s10, %s795_s2  ;;  %p799_p8 = scmp.lt.u32.totalorder %s795_s2, %s1073_s10 }
 0x317   :  { %p801_p9 = pnand %p799_p8, %p796_p7 }
 0x319   :  { %804 = shalt.err (!%p801_p9)
}
 0x31a   :  { %577 = dma.vmem_to_hbm [thread:$0]  %s575_s9, 16, %s1073_s10, [#allocation5]  }
 0x31b   :  { %809 = dma.done.wait [#allocation5], 16  }
 0x31c   :  { %810 = vsyncadd [#allocation5], 4294967280 }
 0x31d   :  { %581 = vsyncpa [#allocation4], 1 }
 0x31e   :  { %582 = vsyncpa [#allocation7], 1 }
 0x31f   :  { %583 = vsyncpa [#allocation5], 1 }

// kernel: tpu_custom_call.1
= control target key start
LH: loop header
LB: loop body
LE: loop exit
PB: predicated region body
PF: predicated region fallthrough
CT: control target
= control target key end

     0   :  { %s1063_s0 = inlined_call_operand.hbm [shape: s32[3,128], index: 0, kind: input, shape index: {}]   ;;  %s1064_s1 = inlined_call_operand.hbm [shape: f32[4,128], index: 1, kind: input, shape index: {}]   ;;  %s1065_s2 = inlined_call_operand.vmem [shape: f32[32,60], index: 2, kind: input, shape index: {}]   ;;  %s1066_s3 = inlined_call_operand.vmem [shape: f32[32,32], index: 3, kind: input, shape index: {}]   ;;  %s1067_s4 = inlined_call_operand.vmem [shape: f32[32,1], index: 4, kind: input, shape index: {}]   ;;  %s1068_s5 = inlined_call_operand.vmem [shape: f32[16,32], index: 5, kind: input, shape index: {}]   ;;  %s1069_s6 = inlined_call_operand.vmem [shape: f32[16,1], index: 6, kind: input, shape index: {}]   ;;  %s1070_s7 = inlined_call_operand.vmem [shape: f32[4,1], index: 7, kind: input, shape index: {}]   ;;  %s1071_s8 = inlined_call_operand.vmem [shape: f32[16,1], index: 8, kind: input, shape index: {}]   ;;  %s1072_s9 = inlined_call_operand.<no memory space> [shape: f32[1,1], index: 9, kind: input, shape index: {}]   ;;  %s1073_s10 = inlined_call_operand.hbm [shape: f32[1,128], index: 10, kind: output, shape index: {}]  }
   0x1   :  { %v15_v0 = vstv %s1072_s9 }
   0x2   :  { %16 = vst [vmem:[#allocation2] sm:$0x1] %v15_v0 }
   0x3   :  { %17 = vsyncpa [#allocation4], 0 }
   0x4   :  { %18 = vsyncpa [#allocation7], 0 }
   0x5   :  { %19 = vsyncpa [#allocation5], 0  ;;  %s811_s15 = smov [#allocation3]   ;;  %s812_s17 = smov [#allocation6]  }
   0x6   :  { %s26_s16 = sshll.u32 %s811_s15, 4  ;;  %s36_s18 = sshll.u32 %s812_s17, 4  ;;  %s27_s16 = int_to_ptr.vmem [resolvable:$true] %s26_s16  ;;  %s37_s18 = int_to_ptr.vmem [resolvable:$true] %s36_s18 }
   0x7   :  { %s739_s21 = scalar_lea.hbm %s1063_s0, 64 }
   0x8   :  { %p740_p0 = scmp.ne.s32.totalorder %s1063_s0, %s739_s21  ;;  %p743_p1 = scmp.lt.u32.totalorder %s739_s21, %s1063_s0 }
   0xa   :  { %p745_p2 = pnand %p743_p1, %p740_p0 }
   0xc   :  { %748 = shalt.err (!%p745_p2)
}
   0xd   :  { %s749_s25 = scalar_lea.vmem %s27_s16, 64  ;;  %p754_p4 = scmp.lt.s32.totalorder %s27_s16, %s27_s16 }
   0xe   :  { %p750_p3 = scmp.ne.s32.totalorder %s27_s16, %s749_s25  ;;  %p755_p5 = scmp.lt.s32.totalorder %s749_s25, %s749_s25 }
  0x10   :  { %p756_p6 = por %p755_p5, %p754_p4 }
  0x12   :  { %p757_p7 = pnand %p756_p6, %p750_p3 }
  0x14   :  { %760 = shalt.err (!%p757_p7)
}
  0x15   :  { %29 = dma.hbm_to_vmem [thread:$0]  %s1063_s0, 64, %s27_s16, [#allocation4]  }
  0x16   :  { %s761_s30 = scalar_lea.hbm %s1064_s1, 64 }
  0x17   :  { %p762_p8 = scmp.ne.s32.totalorder %s1064_s1, %s761_s30  ;;  %p765_p9 = scmp.lt.u32.totalorder %s761_s30, %s1064_s1 }
  0x19   :  { %p767_p10 = pnand %p765_p9, %p762_p8 }
  0x1b   :  { %770 = shalt.err (!%p767_p10)
}
  0x1c   :  { %s771_s15 = scalar_lea.vmem %s37_s18, 64  ;;  %p776_p12 = scmp.lt.s32.totalorder %s37_s18, %s37_s18 }
  0x1d   :  { %p772_p11 = scmp.ne.s32.totalorder %s37_s18, %s771_s15  ;;  %p777_p13 = scmp.lt.s32.totalorder %s771_s15, %s771_s15 }
  0x1f   :  { %p778_p0 = por %p777_p13, %p776_p12 }
  0x21   :  { %p779_p1 = pnand %p778_p0, %p772_p11 }
  0x23   :  { %782 = shalt.err (!%p779_p1)
}
  0x24   :  { %39 = dma.hbm_to_vmem [thread:$0]  %s1064_s1, 64, %s37_s18, [#allocation7]  }
  0x25   :  { %805 = dma.done.wait [#allocation4], 64  }
  0x26   :  { %806 = vsyncadd [#allocation4], 4294967232 }
  0x27   :  { %807 = dma.done.wait [#allocation7], 64  }
  0x28   :  { %808 = vsyncadd [#allocation7], 4294967232  ;;  %v63_v1 = vlaneseq  ;;  %vm184_vm0 = vcmask 490496   ;;  %v62_v7 = vld [vmem:[#allocation3] sm:$0x7]  ;;  %v813_v18 = vmov 0.0  }
  0x29   :  { %v180_v9 = vld [vmem:[%s1065_s2] sm:$0xff]  ;;  %vm197_vm14 = vcmask 1043456   ;;  %v181_v63 = vld [vmem:[%s1065_s2 + $0x8] sm:$0xff]  ;;  %v182_v0 = vld [vmem:[%s1065_s2 + $0x10] sm:$0xff] }
  0x2a   :  { %v899_v2 = vshrl.u32 %v63_v1, 7  ;;  %662 = vmatprep.mubr.msk.f32.mxu0 %vm184_vm0, %v180_v9  ;;  %v183_v1 = vld [vmem:[%s1065_s2 + $0x18] sm:$0xff] }
  0x2b   :  { %v293_v9 = vld [vmem:[%s1067_s4 + $0x18] sm:$0xff] }
  0x2c   :  { %v74_v3 = vsub.s32 0, %v899_v2  ;;  %v110_v4 = vsub.s32 1, %v899_v2  ;;  %v146_v5 = vsub.s32 2, %v899_v2  ;;  %v65_v6 = vadd.s32 8, %v899_v2 }
  0x2d   :  { %v66_v8 = vadd.s32 16, %v899_v2  ;;  %v67_v13 = vadd.s32 24, %v899_v2  ;;  %v68_v14 = vadd.s32 32, %v899_v2  ;;  %v69_v15 = vadd.s32 40, %v899_v2 }
  0x2e   :  { %v911_v10 = vrot.slane %v62_v7, %v74_v3  ;;  %v913_v11 = vrot.slane %v62_v7, %v110_v4  ;;  %v915_v12 = vrot.slane %v62_v7, %v146_v5  ;;  %v922_v16 = vadd.s32 48, %v899_v2  ;;  %v286_v4 = vld [vmem:[%s1066_s3] sm:$0xff]  ;;  %v292_v7 = vld [vmem:[%s1067_s4 + $0x10] sm:$0xff] }
  0x2f   :  { %v925_v17 = vadd.s32 56, %v899_v2  ;;  %v290_v5 = vld [vmem:[%s1067_s4] sm:$0xff] }
  0x30   :  { %vm76_vm1 = vcmp.eq.s32.totalorder %v899_v2, %v911_v10  ;;  %vm77_vm2 = vcmp.eq.s32.totalorder %v65_v6, %v911_v10  ;;  %vm112_vm3 = vcmp.eq.s32.totalorder %v899_v2, %v913_v11  ;;  %vm113_vm4 = vcmp.eq.s32.totalorder %v65_v6, %v913_v11 }
  0x31   :  { %v584_v19 = vsel %vm76_vm1, 1.0, %v813_v18  ;;  %v585_v20 = vsel %vm77_vm2, 1.0, %v813_v18  ;;  %v592_v21 = vsel %vm112_vm3, 1.0, %v813_v18  ;;  %v593_v22 = vsel %vm113_vm4, 1.0, %v813_v18 }
  0x32   :  { %v136_v23 = vadd.f32 %v592_v21, %v584_v19  ;;  %v137_v24 = vadd.f32 %v593_v22, %v585_v20  ;;  %vm148_vm5 = vcmp.eq.s32.totalorder %v899_v2, %v915_v12  ;;  %vm149_vm6 = vcmp.eq.s32.totalorder %v65_v6, %v915_v12  ;;  %v287_v22 = vld [vmem:[%s1066_s3 + $0x8] sm:$0xff] }
  0x33   :  { %v600_v25 = vsel %vm148_vm5, 1.0, %v813_v18  ;;  %v601_v26 = vsel %vm149_vm6, 1.0, %v813_v18  ;;  %vm78_vm7 = vcmp.eq.s32.totalorder %v66_v8, %v911_v10  ;;  %vm79_vm8 = vcmp.eq.s32.totalorder %v67_v13, %v911_v10 }
  0x34   :  { %v172_v27 = vadd.f32 %v600_v25, %v136_v23  ;;  %v173_v28 = vadd.f32 %v601_v26, %v137_v24  ;;  %v586_v29 = vsel %vm78_vm7, 1.0, %v813_v18  ;;  %v587_v30 = vsel %vm79_vm8, 1.0, %v813_v18  ;;  %v288_v23 = vld [vmem:[%s1066_s3 + $0x10] sm:$0xff]  ;;  %v289_v24 = vld [vmem:[%s1066_s3 + $0x18] sm:$0xff]  ;;  %v416_v25 = vld [vmem:[%s1068_s5] sm:$0xff] }
  0x35   :  { %vm114_vm9 = vcmp.eq.s32.totalorder %v66_v8, %v913_v11  ;;  %vm115_vm10 = vcmp.eq.s32.totalorder %v67_v13, %v913_v11  ;;  %vm150_vm11 = vcmp.eq.s32.totalorder %v66_v8, %v915_v12  ;;  %vm151_vm12 = vcmp.eq.s32.totalorder %v67_v13, %v915_v12  ;;  %v291_v8 = vld [vmem:[%s1067_s4 + $0x8] sm:$0xff] }
  0x36   :  { %v693_v31 = vpack.c.bf16 %v173_v28, %v172_v27  ;;  %v594_v32 = vsel %vm114_vm9, 1.0, %v813_v18  ;;  %v595_v33 = vsel %vm115_vm10, 1.0, %v813_v18  ;;  %v602_v34 = vsel %vm150_vm11, 1.0, %v813_v18  ;;  %v529_v13 = vld [vmem:[%s1071_s8 + $0x8] sm:$0xff] }
  0x37   :  { %v138_v35 = vadd.f32 %v594_v32, %v586_v29  ;;  %v139_v36 = vadd.f32 %v595_v33, %v587_v30  ;;  %v603_v37 = vsel %vm151_vm12, 1.0, %v813_v18  ;;  %vm80_vm13 = vcmp.eq.s32.totalorder %v68_v14, %v911_v10 }
  0x38   :  { %694 = vmatprep.subr.bf16.mxu0 %v693_v31  ;;  %vm81_vm15 = vcmp.eq.s32.totalorder %v69_v15, %v911_v10  ;;  %v588_v38 = vsel %vm80_vm13, 1.0, %v813_v18  ;;  %vm116_vm1 = vcmp.eq.s32.totalorder %v68_v14, %v913_v11  ;;  %vm117_vm2 = vcmp.eq.s32.totalorder %v69_v15, %v913_v11 }
  0x39   :  { %696 = vmatpush3.bf16.msra.mxu0 %v693_v31  ;;  %v174_v39 = vadd.f32 %v602_v34, %v138_v35  ;;  %v175_v40 = vadd.f32 %v603_v37, %v139_v36  ;;  %v589_v41 = vsel %vm81_vm15, 1.0, %v813_v18  ;;  %v596_v42 = vsel %vm116_vm1, 1.0, %v813_v18 }
  0x3a   :  { %v597_v43 = vsel %vm117_vm2, 1.0, %v813_v18  ;;  %v140_v44 = vadd.f32 %v596_v42, %v588_v38  ;;  %vm152_vm3 = vcmp.eq.s32.totalorder %v68_v14, %v915_v12  ;;  %vm153_vm4 = vcmp.eq.s32.totalorder %v69_v15, %v915_v12  ;;  %v514_v14 = vld [vmem:[%s1070_s7] sm:$0xf] }
  0x3b   :  { %v697_v45 = vpack.c.bf16 %v175_v40, %v174_v39  ;;  %v141_v46 = vadd.f32 %v597_v43, %v589_v41  ;;  %v604_v47 = vsel %vm152_vm3, 1.0, %v813_v18  ;;  %v605_v48 = vsel %vm153_vm4, 1.0, %v813_v18  ;;  %v550_v15 = vld [vmem:[#allocation2] sm:$0x1] }
  0x3c   :  { %v176_v49 = vadd.f32 %v604_v47, %v140_v44  ;;  %vm82_vm5 = vcmp.eq.s32.totalorder %v922_v16, %v911_v10  ;;  %vm83_vm6 = vcmp.eq.s32.totalorder %v925_v17, %v911_v10  ;;  %vm118_vm7 = vcmp.eq.s32.totalorder %v922_v16, %v913_v11  ;;  %v418_v10 = vld [vmem:[%s1069_s6] sm:$0xff]  ;;  %v417_v44 = vld [vmem:[%s1068_s5 + $0x8] sm:$0xff]  ;;  %s816_s5 = smov [#allocation8]  }
  0x3d   :  { %698 = vmatprep.subr.bf16.mxu0 %v697_v45  ;;  %v177_v50 = vadd.f32 %v605_v48, %v141_v46  ;;  %v590_v51 = vsel %vm82_vm5, 1.0, %v813_v18  ;;  %v591_v52 = vsel %vm83_vm6, 1.0, %v813_v18  ;;  %vm119_vm8 = vcmp.eq.s32.totalorder %v925_v17, %v913_v11  ;;  %v419_v11 = vld [vmem:[%s1069_s6 + $0x8] sm:$0xff]  ;;  %s574_s9 = sshll.u32 %s816_s5, 4  ;;  %s575_s9 = int_to_ptr.vmem [resolvable:$true] %s574_s9 }
  0x3e   :  { %700 = vmatpush3.bf16.msra.mxu0 %v697_v45  ;;  %v598_v53 = vsel %vm118_vm7, 1.0, %v813_v18  ;;  %v599_v54 = vsel %vm119_vm8, 1.0, %v813_v18  ;;  %vm154_vm9 = vcmp.eq.s32.totalorder %v922_v16, %v915_v12  ;;  %vm155_vm10 = vcmp.eq.s32.totalorder %v925_v17, %v915_v12  ;;  %v528_v12 = vld [vmem:[%s1071_s8] sm:$0xff]  ;;  %s783_s25 = scalar_lea.vmem %s575_s9, 16  ;;  %s787_s26 = scalar_lea.vmem %s575_s9, 32 }
  0x3f   :  { %v701_v55 = vpack.c.bf16 %v177_v50, %v176_v49  ;;  %v142_v56 = vadd.f32 %v598_v53, %v590_v51  ;;  %v143_v57 = vadd.f32 %v599_v54, %v591_v52  ;;  %v606_v58 = vsel %vm154_vm9, 1.0, %v813_v18  ;;  %v513_v47 = vld [vmem:[#allocation6] sm:$0xf]  ;;  %p784_p2 = scmp.ne.s32.totalorder %s575_s9, %s783_s25  ;;  %p788_p3 = scmp.lt.s32.totalorder %s575_s9, %s575_s9 }
  0x40   :  { %v607_v59 = vsel %vm155_vm10, 1.0, %v813_v18  ;;  %vm814_vm11 = vmmov 1   ;;  %vm314_vm13 = vcmask 261120   ;;  %v815_v6 = vmov 0   ;;  %p789_p4 = scmp.lt.s32.totalorder %s787_s26, %s783_s25 }
  0x41   :  { %702 = vmatprep.subr.bf16.mxu0 %v701_v55  ;;  %v178_v60 = vadd.f32 %v606_v58, %v142_v56  ;;  %v179_v61 = vadd.f32 %v607_v59, %v143_v57  ;;  %vm706_vm12 = vmpackc.low %vm197_vm14, %vm814_vm11  ;;  %676 = vmatprep.mubr.msk.f32.mxu1 %vm314_vm13, %v286_v4 }
  0x42   :  { %704 = vmatpush3.bf16.msra.mxu0 %v701_v55  ;;  %733 = vset.pattern.permute.xlu0 %v815_v6  ;;  %p790_p5 = por %p789_p4, %p788_p3 }
  0x43   :  { %v705_v62 = vpack.c.bf16 %v179_v61, %v178_v60  ;;  %734 = vset.pattern.permute.xlu1 %v815_v6  ;;  %296 = vperm.xlu0 %733, %v290_v5  }
  0x44   :  { %306 = vperm.xlu1 %734, %v292_v7   ;;  %p791_p6 = pnand %p790_p5, %p784_p2 }
  0x45   :  { %707 = vmatprep.subr.msk.bf16.mxu0 %vm706_vm12, %v705_v62 }
  0x46   :  { %710 = vmatpush3.bf16.msk.msra.mxu0 %vm706_vm12, %v705_v62 }
  0x47   :  { %301 = vperm.xlu0 %733, %v291_v8  }
  0x48   :  { %311 = vperm.xlu1 %734, %v293_v9  }
  0x49   :  { %663 = vmatmul.mubr.msk.f32.vlgmr.msra.gmra.mrb[0].mxu0 %vm184_vm0, %v181_v63 }
  0x4a   :  { %665 = vmatprep.mubr.msk.f32.mxu0 %vm184_vm0, %v182_v0 }
  0x4b   :  { %422 = vperm.xlu0 %733, %v418_v10  }
  0x4c   :  { %427 = vperm.xlu1 %734, %v419_v11  }
  0x4d   :  { %666 = vmatmul.mubr.msk.f32.gmra.mrb[2].mxu0 %vm184_vm0, %v183_v1 }
  0x4f   :  { %532 = vperm.xlu0 %733, %v528_v12  }
  0x50   :  { %537 = vperm.xlu1 %734, %v529_v13  }
  0x53   :  { %517 = vperm.xlu0 %733, %v514_v14  }
  0x54   :  { %553 = vperm.xlu1 %734, %v550_v15  }
  0xc2   :  { %v297_v26 = vpop.permute.xlu0 %296 }
  0xc3   :  { %v307_v27 = vpop.permute.xlu1 %306 }
  0xc6   :  { %v302_v28 = vpop.permute.xlu0 %301 }
  0xc7   :  { %v312_v34 = vpop.permute.xlu1 %311 }
  0xca   :  { %v423_v45 = vpop.permute.xlu0 %422 }
  0xcb   :  { %v428_v51 = vpop.permute.xlu1 %427 }
  0xce   :  { %v533_v46 = vpop.permute.xlu0 %532 }
  0xcf   :  { %v538_v59 = vpop.permute.xlu1 %537 }
  0xd2   :  { %v518_v48 = vpop.permute.xlu0 %517 }
  0xd3   :  { %v520_v49 = vmul.f32 %v518_v48, %v513_v47  ;;  %v554_v10 = vpop.permute.xlu1 %553 }
  0xd4   :  { %v559_v13 = vrot.slane %v554_v10, %v74_v3 }
  0xd5   :  { %v521_v50 = vsel %vm197_vm14, %v520_v49, 0.0 }
  0xd6   :  { %v522_v52 = vrot.slane %v521_v50, 4 }
  0xd8   :  { %v523_v58 = vadd.f32 %v522_v52, %v521_v50 }
  0xda   :  { %v524_v63 = vrot.slane %v523_v58, 2 }
  0xdc   :  { %v525_v4 = vadd.f32 %v524_v63, %v523_v58 }
  0xde   :  { %v526_v7 = vrot.slane %v525_v4, 1 }
  0xe0   :  { %v527_v11 = vadd.f32 %v526_v7, %v525_v4 }
 0x11c   :  { %v664_v16 = vpop.f32.mrb[0].mxu0 }
 0x11d   :  { %v267_v17 = vpop.f32.mrb[1].mxu0 }
 0x11e   :  { %v711_v18 = vpack.c.bf16 %v664_v16, %v267_v17 }
 0x120   :  { %v667_v19 = vpop.f32.mrb[2].mxu0  ;;  %712 = vmatprep.subr.bf16.mxu1 %v711_v18 }
 0x121   :  { %v277_v20 = vpop.f32.mrb[3].mxu0  ;;  %714 = vmatpush3.bf16.msra.mxu1 %v711_v18 }
 0x122   :  { %v715_v21 = vpack.c.bf16 %v667_v19, %v277_v20 }
 0x124   :  { %716 = vmatprep.subr.bf16.mxu1 %v715_v21 }
 0x125   :  { %718 = vmatpush3.bf16.msra.mxu1 %v715_v21 }
 0x128   :  { %677 = vmatmul.mubr.msk.f32.vlgmr.msra.gmra.mrb[0].mxu1 %vm314_vm13, %v287_v22 }
 0x129   :  { %679 = vmatprep.mubr.msk.f32.mxu1 %vm314_vm13, %v288_v23 }
 0x12c   :  { %680 = vmatmul.mubr.msk.f32.gmra.mrb[2].mxu1 %vm314_vm13, %v289_v24 }
 0x12d   :  { %690 = vmatprep.mubr.msk.f32.mxu1 %vm314_vm13, %v416_v25 }
 0x1fb   :  { %v678_v29 = vpop.f32.mrb[0].mxu1 }
 0x1fc   :  { %v399_v30 = vadd.f32 %v678_v29, %v302_v28  ;;  %v393_v31 = vpop.f32.mrb[1].mxu1 }
 0x1fd   :  { %v394_v32 = vadd.f32 %v393_v31, %v297_v26 }
 0x1fe   :  { %v413_v33 = vmax.f32 %v399_v30, 0.0 }
 0x1ff   :  { %v412_v35 = vmax.f32 %v394_v32, 0.0  ;;  %v681_v36 = vpop.f32.mrb[2].mxu1 }
 0x200   :  { %v409_v37 = vadd.f32 %v681_v36, %v312_v34  ;;  %v403_v38 = vpop.f32.mrb[3].mxu1 }
 0x201   :  { %v719_v39 = vpack.c.bf16 %v413_v33, %v412_v35  ;;  %v404_v40 = vadd.f32 %v403_v38, %v307_v27 }
 0x202   :  { %v415_v41 = vmax.f32 %v409_v37, 0.0 }
 0x203   :  { %v414_v42 = vmax.f32 %v404_v40, 0.0  ;;  %720 = vmatprep.subr.bf16.mxu1 %v719_v39 }
 0x204   :  { %722 = vmatpush3.bf16.msra.mxu1 %v719_v39 }
 0x205   :  { %v723_v43 = vpack.c.bf16 %v415_v41, %v414_v42 }
 0x207   :  { %724 = vmatprep.subr.bf16.mxu1 %v723_v43 }
 0x208   :  { %726 = vmatpush3.bf16.msra.mxu1 %v723_v43 }
 0x20b   :  { %691 = vmatmul.mubr.msk.f32.vlgmr.msra.gmra.mrb[4].mxu1 %vm314_vm13, %v417_v44 }
 0x2de   :  { %v692_v53 = vpop.f32.mrb[4].mxu1 }
 0x2df   :  { %v508_v54 = vadd.f32 %v692_v53, %v428_v51  ;;  %v502_v55 = vpop.f32.mrb[5].mxu1 }
 0x2e0   :  { %v503_v56 = vadd.f32 %v502_v55, %v423_v45 }
 0x2e1   :  { %v512_v57 = vmax.f32 %v508_v54, 0.0 }
 0x2e2   :  { %v511_v60 = vmax.f32 %v503_v56, 0.0 }
 0x2e3   :  { %v541_v61 = vmul.f32 %v538_v59, %v512_v57 }
 0x2e4   :  { %v540_v62 = vmul.f32 %v533_v46, %v511_v60 }
 0x2e6   :  { %v542_v0 = vadd.f32 %v541_v61, %v540_v62 }
 0x2e8   :  { %v543_v1 = vrot.slane %v542_v0, 4 }
 0x2ea   :  { %v544_v5 = vadd.f32 %v543_v1, %v542_v0 }
 0x2ec   :  { %v545_v6 = vrot.slane %v544_v5, 2 }
 0x2ee   :  { %v546_v8 = vadd.f32 %v545_v6, %v544_v5 }
 0x2f0   :  { %v547_v9 = vrot.slane %v546_v8, 1 }
 0x2f2   :  { %v548_v12 = vadd.f32 %v547_v9, %v546_v8 }
 0x2f4   :  { %v549_v14 = vadd.f32 %v548_v12, %v527_v11 }
 0x2f6   :  { %v560_v15 = vadd.f32 %v559_v13, %v549_v14 }
 0x2f8   :  { %v619_v16 = vmul.f32 -1.442695, %v560_v15 }
 0x2fa   :  { %735 = vpow2.f32 %v619_v16 }
 0x304   :  { %v736_v17 = vpop.eup %735 }
 0x305   :  { %v564_v18 = vadd.f32 1.0, %v736_v17 }
 0x307   :  { %737 = vrcp.f32 %v564_v18 }
 0x311   :  { %v738_v19 = vpop.eup %737 }
 0x312   :  { %567 = vst [vmem:[#allocation8] sm:$0x1] %v738_v19 }
 0x313   :  { %794 = shalt.err (!%p791_p6)
}
 0x314   :  { %s795_s2 = scalar_lea.hbm %s1073_s10, 16 }
 0x315   :  { %p796_p7 = scmp.ne.s32.totalorder %s1073_s10, %s795_s2  ;;  %p799_p8 = scmp.lt.u32.totalorder %s795_s2, %s1073_s10 }
 0x317   :  { %p801_p9 = pnand %p799_p8, %p796_p7 }
 0x319   :  { %804 = shalt.err (!%p801_p9)
}
 0x31a   :  { %577 = dma.vmem_to_hbm [thread:$0]  %s575_s9, 16, %s1073_s10, [#allocation5]  }
 0x31b   :  { %809 = dma.done.wait [#allocation5], 16  }
 0x31c   :  { %810 = vsyncadd [#allocation5], 4294967280 }
 0x31d   :  { %581 = vsyncpa [#allocation4], 1 }
 0x31e   :  { %582 = vsyncpa [#allocation7], 1 }
 0x31f   :  { %583 = vsyncpa [#allocation5], 1 }

</bundles_post_ra>
